<compile_context>
chip_gen: v6e
topology: v6e:2x2x1
jax: 0.10.0
libtpu: 0.0.40
codegen_flags: <defaults>
</compile_context>

<pallas_src>
import functools

import jax
import jax.numpy as jnp
from jax import lax
from jax.experimental import pallas as pl
from jax.experimental.pallas import tpu as pltpu


def _vmem_capacity_bytes():
    """Physical VMEM per TensorCore; fall back to the small v7x budget."""
    try:
        return int(pltpu.get_tpu_info().vmem_capacity_bytes)
    except Exception:
        return 64 * 1024 * 1024


def _pass1_kernel(x_ref, w_ref, ba_ref, g_ref, mv_ref, mb, sb, sv, *,
                  n_total, tile_n, masked, emit_transposed, compute_dtype):
    c = ba_ref.shape[0]
    nt = pl.program_id(1)

    @pl.when(nt == 0)
    def _init():
        g_ref[0] = jnp.zeros_like(g_ref[0])
        mv_ref[0] = jnp.full_like(mv_ref[0], -jnp.inf)
        mb[...] = jnp.full_like(mb, -jnp.inf)
        sb[...] = jnp.zeros_like(sb)
        sv[...] = jnp.zeros_like(sv)

    # Fused 1x1 convs: one (3C, C) @ (C, tn) MXU matmul, f32 accumulation.
    # Operands already arrive in compute_dtype from the wrapper (no per-tile cast).
    x = x_ref[0]                                              # (C, tn)
    abc = jnp.dot(w_ref[...], x, preferred_element_type=jnp.float32)  # (3C, tn)
    a = abc[0:c] + ba_ref[...]                                # (C, tn)
    b = abc[c:2 * c]        # conv-B bias dropped: softmax over N is shift-inv.
    v = abc[2 * c:3 * c]    # conv-V bias dropped: softmax over N is shift-inv.

    if masked:
        # N was padded to a multiple of tile_n in the wrapper; kill padded
        # lanes (exp(-inf - m) == 0 keeps all reductions exact).
        lane = lax.broadcasted_iota(jnp.int32, (c, tile_n), 1)
        valid = nt * tile_n + lane < n_total
        b = jnp.where(valid, b, -jnp.inf)
        v = jnp.where(valid, v, -jnp.inf)

    # ---- online softmax stats for B + rescaled G accumulation --------------
    mb_old = mb[...]                                          # (C, 1)
    mb_new = jnp.maximum(mb_old, jnp.max(b, axis=-1, keepdims=True))
    corr_b = jnp.exp(mb_old - mb_new)                         # (C, 1)
    eb = jnp.exp(b - mb_new)                                  # (C, tn)
    sb[...] = sb[...] * corr_b + jnp.sum(eb, axis=-1, keepdims=True)
    mb[...] = mb_new

    # G_raw[i, j] += sum_n eb[i, n] * a[j, n]; accumulate directly into the
    # VMEM-resident output block (same block index over the whole nt axis).
    g_part = lax.dot_general(eb.astype(compute_dtype), a.astype(compute_dtype),
                             (((1,), (1,)), ((), ())),
                             preferred_element_type=jnp.float32)   # (C, C)
    g_ref[0] = g_ref[0] * corr_b + g_part

    # ---- online softmax stats for V (running max lives in the mv output) ---
    mv_old = mv_ref[0]
    mv_new = jnp.maximum(mv_old, jnp.max(v, axis=-1, keepdims=True))
    sv[...] = (sv[...] * jnp.exp(mv_old - mv_new)
               + jnp.sum(jnp.exp(v - mv_new), axis=-1, keepdims=True))
    mv_ref[0] = mv_new

    @pl.when(nt == pl.num_programs(1) - 1)
    def _finalize():
        # Fold both softmax denominators and the 1/N mean into the tiny (C, C)
        # descriptor (exact reciprocal: only C values once per batch element).
        inv = 1.0 / (float(n_total) * sb[...] * sv[...])      # (C, 1)
        g_scaled = g_ref[0] * inv
        if emit_transposed:
            g_scaled = jnp.transpose(g_scaled)  # once per batch element (XLU)
        g_ref[0] = g_scaled


def _pass2_kernel(wv_ref, x_ref, gt_ref, mv_ref, o_ref, *, compute_dtype):
    # v = W_V @ x (recompute is cheaper than an extra CxN HBM round trip on
    # HBM-bound v6e/v7x).
    v = jnp.dot(wv_ref[...], x_ref[0], preferred_element_type=jnp.float32)
    ev = jnp.exp(v - mv_ref[0]).astype(compute_dtype)         # (C, tn), unnorm.
    # out[j, n] = sum_i G^T[j, i] * ev[i, n]  — canonical (M,K)x(K,N) MXU dot.
    out = jnp.dot(gt_ref[...] if gt_ref.ndim == 2 else gt_ref[0], ev,
                  preferred_element_type=jnp.float32)
    o_ref[0] = out.astype(o_ref.dtype)


def double_atten(x, wa, ba, wb, bb, wv, bv, *, block_n=None,
                 compute_dtype=jnp.bfloat16):
    """x: (B, C, H, W); w*: (C, C); b*: (C,).

    bb / bv are accepted for API parity but mathematically drop out
    (softmax over the spatial axis is invariant to a per-channel shift).
    """
    del bb, bv
    bsz, c, h, w = x.shape
    n = h * w

    # --- per-generation tiling / VMEM budget ---------------------------------
    vmem_cap = _vmem_capacity_bytes()
    small_vmem = vmem_cap < (100 << 20)      # v7x: 64 MiB/TC; v5e/v6e: 128 MiB
    if block_n is None:
        block_n = 384 if small_vmem else 1024
    vmem_limit = (40 << 20) if small_vmem else (64 << 20)

    # Lane-aligned spatial tile; pad N up to a multiple of it and mask the
    # padded lanes in-kernel (no untiled tn=N fallback).
    tn = max(128, min((int(block_n) // 128) * 128, pl.cdiv(n, 128) * 128))
    n_pad = pl.cdiv(n, tn) * tn
    num_nt = n_pad // tn
    masked = n_pad != n

    x_flat = x.reshape(bsz, c, n)
    if masked:
        x_flat = jnp.pad(x_flat, ((0, 0), (0, 0), (0, n_pad - n)))

    # Cast streamed operands ONCE here (the kernels see compute_dtype inputs):
    # halves HBM traffic + double-buffered VMEM on the bf16 fast path.
    x_c = x_flat.astype(compute_dtype)
    w_packed = jnp.concatenate([wa, wb, wv], axis=0).astype(compute_dtype)
    wv_c = wv.astype(compute_dtype)
    ba2 = ba.reshape(c, 1).astype(jnp.float32)

    # Emit G^T directly from pass 1 when C is 128-aligned (free in-kernel
    # transpose once per batch element); otherwise swap the tiny (B,C,C) in XLA.
    emit_transposed = (c % 128 == 0)

    kern1 = functools.partial(
        _pass1_kernel, n_total=n, tile_n=tn, masked=masked,
        emit_transposed=emit_transposed, compute_dtype=compute_dtype)
    g_out, mv = pl.pallas_call(
        kern1,
        out_shape=(jax.ShapeDtypeStruct((bsz, c, c), jnp.float32),
                   jax.ShapeDtypeStruct((bsz, c, 1), jnp.float32)),
        grid_spec=pltpu.PrefetchScalarGridSpec(
            num_scalar_prefetch=0,
            grid=(bsz, num_nt),
            in_specs=[
                pl.BlockSpec((1, c, tn), lambda b, i: (b, 0, i)),   # x tile
                pl.BlockSpec((3 * c, c), lambda b, i: (0, 0)),      # packed W
                pl.BlockSpec((c, 1), lambda b, i: (0, 0)),          # bias A
            ],
            out_specs=[
                pl.BlockSpec((1, c, c), lambda b, i: (b, 0, 0)),    # G (or G^T)
                pl.BlockSpec((1, c, 1), lambda b, i: (b, 0, 0)),    # m_v
            ],
            scratch_shapes=[
                pltpu.VMEM((c, 1), jnp.float32),   # running max (B)
                pltpu.VMEM((c, 1), jnp.float32),   # running sum (B)
                pltpu.VMEM((c, 1), jnp.float32),   # running sum (V)
            ]),
        compiler_params=pltpu.CompilerParams(
            dimension_semantics=("parallel", "arbitrary"),
            vmem_limit_bytes=vmem_limit),
    )(x_c, w_packed, ba2)

    g_t = g_out if emit_transposed else jnp.swapaxes(g_out, 1, 2)
    g_t_c = g_t.astype(compute_dtype)

    kern2 = functools.partial(_pass2_kernel, compute_dtype=compute_dtype)
    out_flat = pl.pallas_call(
        kern2,
        out_shape=jax.ShapeDtypeStruct((bsz, c, n_pad), x.dtype),
        grid_spec=pltpu.PrefetchScalarGridSpec(
            num_scalar_prefetch=0,
            grid=(bsz, num_nt),
            in_specs=[
                pl.BlockSpec((c, c), lambda b, i: (0, 0)),          # W_V
                pl.BlockSpec((1, c, tn), lambda b, i: (b, 0, i)),   # x tile
                pl.BlockSpec((1, c, c), lambda b, i: (b, 0, 0)),    # G^T
                pl.BlockSpec((1, c, 1), lambda b, i: (b, 0, 0)),    # m_v
            ],
            out_specs=pl.BlockSpec((1, c, tn), lambda b, i: (b, 0, i)),
        ),
        compiler_params=pltpu.CompilerParams(
            dimension_semantics=("parallel", "parallel"),
            vmem_limit_bytes=vmem_limit),
    )(wv_c, x_c, g_t_c, mv)

    if masked:
        out_flat = out_flat[:, :, :n]
    return out_flat.reshape(bsz, c, h, w)


def double_atten_ref(x, wa, ba, wb, bb, wv, bv):
    """Pure-JAX reference mirroring the PyTorch forward exactly."""
    bsz, c, h, w = x.shape
    n = h * w
    xf = x.reshape(bsz, c, n)
    a = jnp.einsum("oc,bcn->bon", wa, xf) + ba[None, :, None]
    bmap = jnp.einsum("oc,bcn->bon", wb, xf) + bb[None, :, None]
    v = jnp.einsum("oc,bcn->bon", wv, xf) + bv[None, :, None]

    fm = a.reshape(bsz, 1, c, n)
    am = jax.nn.softmax(bmap.reshape(bsz, c, 1, n), axis=-1)
    g = jnp.mean(fm * am, axis=-1)                        # (b, c, c)
    av = jax.nn.softmax(v.reshape(bsz, c, n), axis=-1)    # (b, c, n)
    out = jnp.matmul(jnp.transpose(av, (0, 2, 1)), g)     # (b, n, c)
    return jnp.transpose(out, (0, 2, 1)).reshape(bsz, c, h, w)


if __name__ == "__main__":
    key = jax.random.PRNGKey(0)

    def make(bsz, c, h, w, scale):
        ks = jax.random.split(key, 7)
        x = jax.random.normal(ks[0], (bsz, c, h, w), dtype=jnp.float32)
        wa = jax.random.normal(ks[1], (c, c), dtype=jnp.float32) * scale
        ba = jax.random.normal(ks[2], (c,), dtype=jnp.float32) * 0.1
        wb = jax.random.normal(ks[3], (c, c), dtype=jnp.float32) * scale
        bb = jax.random.normal(ks[4], (c,), dtype=jnp.float32) * 0.1
        wv = jax.random.normal(ks[5], (c, c), dtype=jnp.float32) * scale
        bv = jax.random.normal(ks[6], (c,), dtype=jnp.float32) * 0.1
        return x, wa, ba, wb, bb, wv, bv

    # Case 1: H*W = 196 (not a multiple of 128) -> exercises the pad+mask
    # online-softmax path with 2 spatial tiles (128 valid + 68 valid/60 pad).
    args = make(2, 8, 14, 14, 0.5)
    ref = jax.block_until_ready(double_atten_ref(*args))

    out_f32 = jax.block_until_ready(
        double_atten(*args, block_n=128, compute_dtype=jnp.float32))
    assert out_f32.shape == args[0].shape
    err = jnp.max(jnp.abs(out_f32 - ref))
    assert jnp.allclose(out_f32, ref, atol=1e-4, rtol=1e-4), f"f32 max err {err}"

    out_bf16 = jax.block_until_ready(
        double_atten(*args, block_n=128, compute_dtype=jnp.bfloat16))
    err = jnp.max(jnp.abs(out_bf16 - ref))
    assert jnp.allclose(out_bf16, ref, atol=2e-2, rtol=5e-2), f"bf16 max err {err}"

    # Case 2: C = 128 -> exercises the in-kernel G^T finalize (no XLA swapaxes)
    # and the multi-tile online softmax without masking.
    args2 = make(1, 128, 16, 16, 0.1)
    ref2 = jax.block_until_ready(double_atten_ref(*args2))
    out2 = jax.block_until_ready(
        double_atten(*args2, block_n=128, compute_dtype=jnp.float32))
    err2 = jnp.max(jnp.abs(out2 - ref2))
    assert jnp.allclose(out2, ref2, atol=5e-4, rtol=5e-4), f"f32 max err {err2}"

    print("KERNEL_OK")
</pallas_src>

<mosaic_0001>
module attributes {stable_mosaic.version = 11 : i64} {
  func.func @_pass1_kernel(%arg0: i32, %arg1: i32, %arg2: memref<1x8x128xf32, #tpu.memory_space<vmem>>, %arg3: memref<24x8xf32, #tpu.memory_space<vmem>>, %arg4: memref<8x1xf32, #tpu.memory_space<vmem>>, %arg5: memref<1x8x8xf32, #tpu.memory_space<vmem>>, %arg6: memref<1x8x1xf32, #tpu.memory_space<vmem>>, %arg7: memref<8x1xf32, #tpu.memory_space<vmem>>, %arg8: memref<8x1xf32, #tpu.memory_space<vmem>>, %arg9: memref<8x1xf32, #tpu.memory_space<vmem>>) attributes {dimension_semantics = [#tpu.dimension_semantics<parallel>, #tpu.dimension_semantics<arbitrary>], iteration_bounds = array<i64: 2, 2>, scalar_prefetch = 0 : i64, scratch_operands = 3 : i64, tpu.core_type = #tpu.core_type<tc>, window_params = [{transform_indices = @transform_0, window_bounds = array<i64: 1, 8, 128>}, {pipeline_mode = #tpu.pipeline_mode<synchronous>, transform_indices = @transform_1, window_bounds = array<i64: 24, 8>}, {pipeline_mode = #tpu.pipeline_mode<synchronous>, transform_indices = @transform_2, window_bounds = array<i64: 8, 1>}, {transform_indices = @transform_3, window_bounds = array<i64: 1, 8, 8>}, {transform_indices = @transform_4, window_bounds = array<i64: 1, 8, 1>}]} {
    %c0_i32 = arith.constant 0 : i32
    %0 = arith.cmpi eq, %arg1, %c0_i32 : i32
    %1 = arith.extui %0 : i1 to i32
    %c0_i32_0 = arith.constant 0 : i32
    %2 = arith.cmpi ne, %1, %c0_i32_0 : i32
    scf.if %2 {
      %cst_39 = arith.constant 0.000000e+00 : f32
      %70 = vector.broadcast %cst_39 : f32 to vector<8x8xf32>
      %c0_40 = arith.constant 0 : index
      %c0_41 = arith.constant 0 : index
      %c0_42 = arith.constant 0 : index
      %71 = vector.load %arg5[%c0_40, %c0_41, %c0_42] : memref<1x8x8xf32, #tpu.memory_space<vmem>>, vector<1x8x8xf32>
      %72 = vector.shape_cast %71 : vector<1x8x8xf32> to vector<8x8xf32>
      %73 = vector.shape_cast %70 : vector<8x8xf32> to vector<1x8x8xf32>
      tpu.vector_store %arg5[%c0_40, %c0_41, %c0_42], %73 {strides = array<i32>} : memref<1x8x8xf32, #tpu.memory_space<vmem>>, vector<1x8x8xf32>,
      %cst_43 = arith.constant 0xFF800000 : f32
      %74 = vector.broadcast %cst_43 : f32 to vector<8x1xf32>
      %c0_44 = arith.constant 0 : index
      %c0_45 = arith.constant 0 : index
      %c0_46 = arith.constant 0 : index
      %75 = vector.load %arg6[%c0_44, %c0_45, %c0_46] : memref<1x8x1xf32, #tpu.memory_space<vmem>>, vector<1x8x1xf32>
      %76 = vector.shape_cast %75 : vector<1x8x1xf32> to vector<8x1xf32>
      %77 = vector.shape_cast %74 : vector<8x1xf32> to vector<1x8x1xf32>
      tpu.vector_store %arg6[%c0_44, %c0_45, %c0_46], %77 {strides = array<i32>} : memref<1x8x1xf32, #tpu.memory_space<vmem>>, vector<1x8x1xf32>,
      %cst_47 = arith.constant 0xFF800000 : f32
      %78 = vector.broadcast %cst_47 : f32 to vector<8x1xf32>
      %c0_48 = arith.constant 0 : index
      %c0_49 = arith.constant 0 : index
      %79 = vector.load %arg7[%c0_48, %c0_49] : memref<8x1xf32, #tpu.memory_space<vmem>>, vector<8x1xf32>
      tpu.vector_store %arg7[%c0_48, %c0_49], %78 {strides = array<i32>} : memref<8x1xf32, #tpu.memory_space<vmem>>, vector<8x1xf32>,
      %cst_50 = arith.constant 0.000000e+00 : f32
      %80 = vector.broadcast %cst_50 : f32 to vector<8x1xf32>
      %c0_51 = arith.constant 0 : index
      %c0_52 = arith.constant 0 : index
      %81 = vector.load %arg8[%c0_51, %c0_52] : memref<8x1xf32, #tpu.memory_space<vmem>>, vector<8x1xf32>
      tpu.vector_store %arg8[%c0_51, %c0_52], %80 {strides = array<i32>} : memref<8x1xf32, #tpu.memory_space<vmem>>, vector<8x1xf32>,
      %cst_53 = arith.constant 0.000000e+00 : f32
      %82 = vector.broadcast %cst_53 : f32 to vector<8x1xf32>
      %c0_54 = arith.constant 0 : index
      %c0_55 = arith.constant 0 : index
      %83 = vector.load %arg9[%c0_54, %c0_55] : memref<8x1xf32, #tpu.memory_space<vmem>>, vector<8x1xf32>
      tpu.vector_store %arg9[%c0_54, %c0_55], %82 {strides = array<i32>} : memref<8x1xf32, #tpu.memory_space<vmem>>, vector<8x1xf32>,
    } else {
    }
    %c0 = arith.constant 0 : index
    %c0_1 = arith.constant 0 : index
    %c0_2 = arith.constant 0 : index
    %3 = vector.load %arg2[%c0, %c0_1, %c0_2] : memref<1x8x128xf32, #tpu.memory_space<vmem>>, vector<1x8x128xf32>
    %4 = vector.shape_cast %3 : vector<1x8x128xf32> to vector<8x128xf32>
    %c0_3 = arith.constant 0 : index
    %c0_4 = arith.constant 0 : index
    %5 = vector.load %arg3[%c0_3, %c0_4] : memref<24x8xf32, #tpu.memory_space<vmem>>, vector<24x8xf32>
    %cst = arith.constant dense<0.000000e+00> : vector<24x128xf32>
    %6 = tpu.matmul %5, %4, %cst {dimension_numbers = #tpu.dot_dimension_numbers<[1], [0], [0], [1], [0, 0, 1, 1], [], []>} : vector<24x8xf32>, vector<8x128xf32>, vector<24x128xf32> -> vector<24x128xf32>
    %7 = vector.extract_strided_slice %6 {offsets = [0, 0], sizes = [8, 128], strides = [1, 1]} : vector<24x128xf32> to vector<8x128xf32>
    %c0_5 = arith.constant 0 : index
    %c0_6 = arith.constant 0 : index
    %8 = vector.load %arg4[%c0_5, %c0_6] : memref<8x1xf32, #tpu.memory_space<vmem>>, vector<8x1xf32>
    %9 = vector.broadcast %8 : vector<8x1xf32> to vector<8x128xf32>
    %10 = arith.addf %7, %9 : vector<8x128xf32>
    %11 = vector.extract_strided_slice %6 {offsets = [8, 0], sizes = [8, 128], strides = [1, 1]} : vector<24x128xf32> to vector<8x128xf32>
    %12 = vector.extract_strided_slice %6 {offsets = [16, 0], sizes = [8, 128], strides = [1, 1]} : vector<24x128xf32> to vector<8x128xf32>
    %13 = tpu.iota {dimensions = array<i32: 1>} : vector<8x128xi32>
    %c128_i32 = arith.constant 128 : i32
    %14 = arith.muli %arg1, %c128_i32 : i32
    %15 = vector.broadcast %14 : i32 to vector<8x128xi32>
    %16 = arith.addi %15, %13 : vector<8x128xi32>
    %c196_i32 = arith.constant 196 : i32
    %17 = vector.broadcast %c196_i32 : i32 to vector<8x128xi32>
    %18 = arith.cmpi slt, %16, %17 : vector<8x128xi32>
    %cst_7 = arith.constant 0xFF800000 : f32
    %19 = vector.broadcast %cst_7 : f32 to vector<8x128xf32>
    %20 = arith.select %18, %11, %19 : vector<8x128xi1>, vector<8x128xf32>
    %cst_8 = arith.constant 0xFF800000 : f32
    %21 = vector.broadcast %cst_8 : f32 to vector<8x128xf32>
    %22 = arith.select %18, %12, %21 : vector<8x128xi1>, vector<8x128xf32>
    %c0_9 = arith.constant 0 : index
    %c0_10 = arith.constant 0 : index
    %23 = vector.load %arg7[%c0_9, %c0_10] : memref<8x1xf32, #tpu.memory_space<vmem>>, vector<8x1xf32>
    %cst_11 = arith.constant dense<0xFF800000> : vector<8xf32>
    %24 = vector.multi_reduction <maximumf>, %20, %cst_11 [1] : vector<8x128xf32> to vector<8xf32>
    %25 = vector.shape_cast %24 : vector<8xf32> to vector<8x1xf32>
    %26 = arith.maximumf %23, %25 : vector<8x1xf32>
    %27 = arith.subf %23, %26 : vector<8x1xf32>
    %28 = math.exp %27 : vector<8x1xf32>
    %29 = vector.broadcast %26 : vector<8x1xf32> to vector<8x128xf32>
    %30 = arith.subf %20, %29 : vector<8x128xf32>
    %31 = math.exp %30 : vector<8x128xf32>
    %c0_12 = arith.constant 0 : index
    %c0_13 = arith.constant 0 : index
    %32 = vector.load %arg8[%c0_12, %c0_13] : memref<8x1xf32, #tpu.memory_space<vmem>>, vector<8x1xf32>
    %33 = arith.mulf %32, %28 : vector<8x1xf32>
    %cst_14 = arith.constant dense<0.000000e+00> : vector<8xf32>
    %34 = vector.multi_reduction <add>, %31, %cst_14 [1] : vector<8x128xf32> to vector<8xf32>
    %35 = vector.shape_cast %34 : vector<8xf32> to vector<8x1xf32>
    %36 = arith.addf %33, %35 : vector<8x1xf32>
    %c0_15 = arith.constant 0 : index
    %c0_16 = arith.constant 0 : index
    %37 = vector.load %arg8[%c0_15, %c0_16] : memref<8x1xf32, #tpu.memory_space<vmem>>, vector<8x1xf32>
    tpu.vector_store %arg8[%c0_15, %c0_16], %36 {strides = array<i32>} : memref<8x1xf32, #tpu.memory_space<vmem>>, vector<8x1xf32>,
    %c0_17 = arith.constant 0 : index
    %c0_18 = arith.constant 0 : index
    %38 = vector.load %arg7[%c0_17, %c0_18] : memref<8x1xf32, #tpu.memory_space<vmem>>, vector<8x1xf32>
    tpu.vector_store %arg7[%c0_17, %c0_18], %26 {strides = array<i32>} : memref<8x1xf32, #tpu.memory_space<vmem>>, vector<8x1xf32>,
    %cst_19 = arith.constant dense<0.000000e+00> : vector<8x8xf32>
    %39 = tpu.matmul %31, %10, %cst_19 {dimension_numbers = #tpu.dot_dimension_numbers<[1], [1], [0], [0], [0, 0, 1, 0], [], []>} : vector<8x128xf32>, vector<8x128xf32>, vector<8x8xf32> -> vector<8x8xf32>
    %c0_20 = arith.constant 0 : index
    %c0_21 = arith.constant 0 : index
    %c0_22 = arith.constant 0 : index
    %40 = vector.load %arg5[%c0_20, %c0_21, %c0_22] : memref<1x8x8xf32, #tpu.memory_space<vmem>>, vector<1x8x8xf32>
    %41 = vector.shape_cast %40 : vector<1x8x8xf32> to vector<8x8xf32>
    %42 = vector.broadcast %28 : vector<8x1xf32> to vector<8x8xf32>
    %43 = arith.mulf %41, %42 : vector<8x8xf32>
    %44 = arith.addf %43, %39 : vector<8x8xf32>
    %c0_23 = arith.constant 0 : index
    %c0_24 = arith.constant 0 : index
    %c0_25 = arith.constant 0 : index
    %45 = vector.load %arg5[%c0_23, %c0_24, %c0_25] : memref<1x8x8xf32, #tpu.memory_space<vmem>>, vector<1x8x8xf32>
    %46 = vector.shape_cast %45 : vector<1x8x8xf32> to vector<8x8xf32>
    %47 = vector.shape_cast %44 : vector<8x8xf32> to vector<1x8x8xf32>
    tpu.vector_store %arg5[%c0_23, %c0_24, %c0_25], %47 {strides = array<i32>} : memref<1x8x8xf32, #tpu.memory_space<vmem>>, vector<1x8x8xf32>,
    %c0_26 = arith.constant 0 : index
    %c0_27 = arith.constant 0 : index
    %c0_28 = arith.constant 0 : index
    %48 = vector.load %arg6[%c0_26, %c0_27, %c0_28] : memref<1x8x1xf32, #tpu.memory_space<vmem>>, vector<1x8x1xf32>
    %49 = vector.shape_cast %48 : vector<1x8x1xf32> to vector<8x1xf32>
    %cst_29 = arith.constant dense<0xFF800000> : vector<8xf32>
    %50 = vector.multi_reduction <maximumf>, %22, %cst_29 [1] : vector<8x128xf32> to vector<8xf32>
    %51 = vector.shape_cast %50 : vector<8xf32> to vector<8x1xf32>
    %52 = arith.maximumf %49, %51 : vector<8x1xf32>
    %c0_30 = arith.constant 0 : index
    %c0_31 = arith.constant 0 : index
    %53 = vector.load %arg9[%c0_30, %c0_31] : memref<8x1xf32, #tpu.memory_space<vmem>>, vector<8x1xf32>
    %54 = arith.subf %49, %52 : vector<8x1xf32>
    %55 = math.exp %54 : vector<8x1xf32>
    %56 = arith.mulf %53, %55 : vector<8x1xf32>
    %57 = vector.broadcast %52 : vector<8x1xf32> to vector<8x128xf32>
    %58 = arith.subf %22, %57 : vector<8x128xf32>
    %59 = math.exp %58 : vector<8x128xf32>
    %cst_32 = arith.constant dense<0.000000e+00> : vector<8xf32>
    %60 = vector.multi_reduction <add>, %59, %cst_32 [1] : vector<8x128xf32> to vector<8xf32>
    %61 = vector.shape_cast %60 : vector<8xf32> to vector<8x1xf32>
    %62 = arith.addf %56, %61 : vector<8x1xf32>
    %c0_33 = arith.constant 0 : index
    %c0_34 = arith.constant 0 : index
    %63 = vector.load %arg9[%c0_33, %c0_34] : memref<8x1xf32, #tpu.memory_space<vmem>>, vector<8x1xf32>
    tpu.vector_store %arg9[%c0_33, %c0_34], %62 {strides = array<i32>} : memref<8x1xf32, #tpu.memory_space<vmem>>, vector<8x1xf32>,
    %c0_35 = arith.constant 0 : index
    %c0_36 = arith.constant 0 : index
    %c0_37 = arith.constant 0 : index
    %64 = vector.load %arg6[%c0_35, %c0_36, %c0_37] : memref<1x8x1xf32, #tpu.memory_space<vmem>>, vector<1x8x1xf32>
    %65 = vector.shape_cast %64 : vector<1x8x1xf32> to vector<8x1xf32>
    %66 = vector.shape_cast %52 : vector<8x1xf32> to vector<1x8x1xf32>
    tpu.vector_store %arg6[%c0_35, %c0_36, %c0_37], %66 {strides = array<i32>} : memref<1x8x1xf32, #tpu.memory_space<vmem>>, vector<1x8x1xf32>,
    %c1_i32 = arith.constant 1 : i32
    %67 = arith.cmpi eq, %arg1, %c1_i32 : i32
    %68 = arith.extui %67 : i1 to i32
    %c0_i32_38 = arith.constant 0 : i32
    %69 = arith.cmpi ne, %68, %c0_i32_38 : i32
    scf.if %69 {
      %c0_39 = arith.constant 0 : index
      %c0_40 = arith.constant 0 : index
      %70 = vector.load %arg8[%c0_39, %c0_40] : memref<8x1xf32, #tpu.memory_space<vmem>>, vector<8x1xf32>
      %cst_41 = arith.constant 1.960000e+02 : f32
      %71 = vector.broadcast %cst_41 : f32 to vector<8x1xf32>
      %72 = arith.mulf %71, %70 : vector<8x1xf32>
      %c0_42 = arith.constant 0 : index
      %c0_43 = arith.constant 0 : index
      %73 = vector.load %arg9[%c0_42, %c0_43] : memref<8x1xf32, #tpu.memory_space<vmem>>, vector<8x1xf32>
      %74 = arith.mulf %72, %73 : vector<8x1xf32>
      %cst_44 = arith.constant 1.000000e+00 : f32
      %75 = vector.broadcast %cst_44 : f32 to vector<8x1xf32>
      %76 = arith.divf %75, %74 : vector<8x1xf32>
      %c0_45 = arith.constant 0 : index
      %c0_46 = arith.constant 0 : index
      %c0_47 = arith.constant 0 : index
      %77 = vector.load %arg5[%c0_45, %c0_46, %c0_47] : memref<1x8x8xf32, #tpu.memory_space<vmem>>, vector<1x8x8xf32>
      %78 = vector.shape_cast %77 : vector<1x8x8xf32> to vector<8x8xf32>
      %79 = vector.broadcast %76 : vector<8x1xf32> to vector<8x8xf32>
      %80 = arith.mulf %78, %79 : vector<8x8xf32>
      %c0_48 = arith.constant 0 : index
      %c0_49 = arith.constant 0 : index
      %c0_50 = arith.constant 0 : index
      %81 = vector.load %arg5[%c0_48, %c0_49, %c0_50] : memref<1x8x8xf32, #tpu.memory_space<vmem>>, vector<1x8x8xf32>
      %82 = vector.shape_cast %81 : vector<1x8x8xf32> to vector<8x8xf32>
      %83 = vector.shape_cast %80 : vector<8x8xf32> to vector<1x8x8xf32>
      tpu.vector_store %arg5[%c0_48, %c0_49, %c0_50], %83 {strides = array<i32>} : memref<1x8x8xf32, #tpu.memory_space<vmem>>, vector<1x8x8xf32>,
    } else {
    }
    return
  }
  func.func @transform_0(%arg0: i32, %arg1: i32) -> (i32, i32, i32) {
    %c0_i32 = arith.constant 0 : i32
    %c0_i32_0 = arith.constant 0 : i32
    return %arg0, %c0_i32, %arg1 : i32, i32, i32
  }
  func.func @transform_1(%arg0: i32, %arg1: i32) -> (i32, i32) {
    %c0_i32 = arith.constant 0 : i32
    %c0_i32_0 = arith.constant 0 : i32
    %c0_i32_1 = arith.constant 0 : i32
    return %c0_i32, %c0_i32_0 : i32, i32
  }
  func.func @transform_2(%arg0: i32, %arg1: i32) -> (i32, i32) {
    %c0_i32 = arith.constant 0 : i32
    %c0_i32_0 = arith.constant 0 : i32
    %c0_i32_1 = arith.constant 0 : i32
    return %c0_i32, %c0_i32_0 : i32, i32
  }
  func.func @transform_3(%arg0: i32, %arg1: i32) -> (i32, i32, i32) {
    %c0_i32 = arith.constant 0 : i32
    %c0_i32_0 = arith.constant 0 : i32
    %c0_i32_1 = arith.constant 0 : i32
    return %arg0, %c0_i32, %c0_i32_0 : i32, i32, i32
  }
  func.func @transform_4(%arg0: i32, %arg1: i32) -> (i32, i32, i32) {
    %c0_i32 = arith.constant 0 : i32
    %c0_i32_0 = arith.constant 0 : i32
    %c0_i32_1 = arith.constant 0 : i32
    return %arg0, %c0_i32, %c0_i32_0 : i32, i32, i32
  }
}

</mosaic_0001>

<bundles_post_ra>
// kernel: tpu_custom_call.1
= control target key start
LH: loop header
LB: loop body
LE: loop exit
PB: predicated region body
PF: predicated region fallthrough
CT: control target
= control target key end

     0   :  { %10 = vsyncpa [#allocation6], 0  ;;  %s1037_s0 = inlined_call_operand.vmem [shape: f32[2,8,256], index: 0, kind: input, shape index: {}]   ;;  %s1038_s1 = inlined_call_operand.vmem [shape: f32[24,8], index: 1, kind: input, shape index: {}]   ;;  %s1039_s2 = inlined_call_operand.vmem [shape: f32[8,1], index: 2, kind: input, shape index: {}]   ;;  %s1040_s3 = inlined_call_operand.hbm [shape: f32[2,8,8], index: 3, kind: output, shape index: {0}]   ;;  %s1041_s4 = inlined_call_operand.vmem [shape: f32[2,8,1], index: 4, kind: output, shape index: {1}]  }
   0x1   :  { %12 = vsyncpa [#allocation6 + $0x1], 0  ;;  %s872_s15 = smov 0   ;;  %s874_s16 = smov 0  }
   0x2   :  { %s876_s17 = smov 0   ;;  %s878_s18 = smov 0  }
   0x3   :  { %s880_s19 = smov 0   ;;  %s882_s20 = smov 0  }
   0x4   :  { %s884_s21 = smov 0   ;;  %s886_s22 = smov 0  }
   0x5 LB: > { %s613_s23 = sadd.s32 4294967295, %s838_s22   ;;  %s614_s24 = sadd.s32 4294967294, %s838_s22   ;;  %s838_s22 = sphi %s886_s22, %s18_s22   ;;  %s834_s21 = sphi %s884_s21, %s1055_s21   ;;  %s830_s20 = sphi %s882_s20, %s1054_s20   ;;  %s826_s19 = sphi %s880_s19, %s1053_s19   ;;  %s822_s18 = sphi %s878_s18, %s1052_s18   ;;  %s818_s17 = sphi %s876_s17, %s1051_s17   ;;  %s814_s16 = sphi %s874_s16, %s1050_s16   ;;  %s810_s15 = sphi %s872_s15, %s1049_s15  }
   0x6   : > { %s27_s25 = sadd.s32 1, %s830_s20  ;;  %s30_s26 = sadd.s32 1, %s834_s21 }
   0x7   : > { %p28_p0 = scmp.ge.s32.totalorder %s27_s25, 2  ;;  %p117_p1 = scmp.ne.s32.totalorder %s818_s17, %s814_s16 }
   0x8   : > { %p118_p2 = scmp.eq.s32.totalorder %s613_s23, 3  ;;  %p123_p4 = scmp.ne.s32.totalorder %s814_s16, %s810_s15 }
   0x9   : > { %s1057_s25 = smov (%p28_p0, %s27_s25), 0  ;;  %s1059_s26 = smov (!%p28_p0, %s30_s26), %s834_s21 }
   0xa   : > { %1043 = sst [smem:[#allocation8_spill]] %s1057_s25  ;;  %p921_p3 = por %p118_p2, %p117_p1 }
   0xb   : > { %p32_p5 = scmp.ge.s32.totalorder %s1059_s26, 2  ;;  %p124_p6 = scmp.eq.s32.totalorder %s614_s24, 3 }
   0xc   : > { %p617_p7 = scmp.ge.s32.totalorder %s838_s22, 1  ;;  %p185_p8 = scmp.lt.s32.totalorder %s838_s22, 5 }
   0xd   : > { %s1061_s26 = smov (%p32_p5, %s1059_s26), 0  ;;  %p931_p9 = por %p124_p6, %p123_p4 }
   0xe   : > { %1045 = sst [smem:[#allocation9_spill]] %s1061_s26  ;;  %p186_p10 = pnand %p617_p7, %p185_p8 }
   0xf   : > { %s104_s29 = ssub.s32 %s834_s21, %s1061_s26  ;;  %s107_s30 = sadd.s32 1, %s818_s17 }
  0x10   : > { %p105_p11 = scmp.eq.s32.totalorder %s104_s29, 0  ;;  %189 = sbr.rel (%p186_p10) target bundleno = 883 (0x373), region = 32 }
  0x11   : > { %s209_s6 = sand.u32 (!%p186_p10), 1, %s814_s16   ;;  %p218_p12 = scmp.lt.s32.totalorder (!%p186_p10), %s826_s19, 1 }
  0x12   : > { %s939_s5 = scalar_select %p105_p11, %s818_s17, %s107_s30  }
  0x13   : > { %s618_s7 = sshll.u32 (!%p186_p10), %s209_s6, 3  ;;  %p220_p13 = scmp.lt.s32.totalorder (!%p186_p10), %s822_s18, 1 }
  0x14   : > { %s956_s25 = scalar_lea.vmem (!%p186_p10), [#allocation5], %s618_s7  ;;  %p622_p0 = scmp.ne.s32.totalorder (!%p186_p10), %s822_s18, 0 }
  0x15   : > { %s219_s8 = scalar_select %p218_p12, %s826_s19, 1 }
  0x16   : > { %s221_s9 = scalar_select %p220_p13, %s822_s18, 1 }
  0x17   : > { %s619_s10 = sshll.u32 %s219_s8, 1  ;;  %s621_s11 = sshll.u32 %s219_s8, 3 }
  0x18   : > { %s223_s12 = sadd.s32 %s619_s10, %s221_s9  ;;  %s951_s23 = scalar_lea.vmem %s1041_s4, %s621_s11 }
  0x19   : > { %s620_s24 = sshll.u32 %s223_s12, 3  ;;  %233 = sbr.rel (%p622_p0) target bundleno = 34 (0x22), region = 36 }
  0x1a   : > { %s225_s26 = scalar_lea.vmem %s1037_s0, %s620_s24 }
  0x1e   : > { %vm234_vm0 = vcmask 64512   ;;  %vm236_vm1 = vcmask 7168   ;;  %v840_v0 = vmov 0.0   ;;  %v841_v1 = vmov -inf  }
  0x1f   : > { %235 = vst.msk [vmem:[%s956_s25] sm:$0xff] %vm234_vm0, %v840_v0 }
  0x20   : > { %237 = vst.msk [vmem:[%s951_s23] sm:$0xff] %vm236_vm1, %v841_v1  ;;  %238 = vst.msk [vmem:[#allocation2] sm:$0xff] %vm236_vm1, %v841_v1 }
  0x21   : > { %239 = vst.msk [vmem:[#allocation3] sm:$0xff] %vm236_vm1, %v840_v0  ;;  %240 = vst.msk [vmem:[#allocation4] sm:$0xff] %vm236_vm1, %v840_v0 }
  0x22 PF: > { %v241_v2 = vld [vmem:[%s225_s26] sm:$0xff]  ;;  %v842_v3 = vmov 0.0   ;;  %vm245_vm2 = vcmask 64512   ;;  %v244_v5 = vld [vmem:[%s1038_s1 + $0x10] sm:$0xff]  ;;  %vm843_vm3 = vmmov 0   ;;  %v243_v7 = vld [vmem:[%s1038_s1 + $0x8] sm:$0xff]  ;;  %v342_v9 = vlaneseq }
  0x23   : > { %638 = vmatprep.subr.mxu0 %v842_v3  ;;  %654 = vmatprep.subr.mxu1 %v842_v3  ;;  %v242_v4 = vld [vmem:[%s1038_s1] sm:$0xff]  ;;  %v844_v8 = vmov 0   ;;  %s626_s14 = sshll.u32 %s822_s18, 7  ;;  %vm370_vm5 = vcmask 7168   ;;  %p627_p1 = scmp.ne.s32.totalorder %s822_s18, 1 }
  0x24   : > { %639 = vmatpush3.msra.mxu0 %v241_v2  ;;  %655 = vmatpush3.msra.mxu1 %v241_v2  ;;  %v335_v6 = vld [vmem:[%s1039_s2] sm:$0xff]  ;;  %v343_v10 = vand.u32 127, %v342_v9  ;;  %v345_v11 = vstv %s626_s14 }
  0x25   : > { %640 = vmatprep.mubr.msk.f32.mxu0 %vm843_vm3, %v842_v3  ;;  %646 = vmatprep.mubr.msk.f32.mxu1 %vm843_vm3, %v842_v3 }
  0x26   : > { %641 = vmatmul.mubr.msk.f32.vlgmr.msra.gmra.mxu0 %vm245_vm2, %v242_v4  ;;  %647 = vmatmul.mubr.msk.f32.vlgmr.msra.gmra.mxu1 %vm245_vm2, %v244_v5  ;;  %v346_v12 = vadd.s32 %v345_v11, %v343_v10  ;;  %v443_v51 = vld [vmem:[%s956_s25] sm:$0xff] }
  0x27   : > { %643 = vmatprep.mubr.msk.f32.mxu0 %vm843_vm3, %v842_v3  ;;  %734 = vset.pattern.permute.xlu1 %v844_v8  ;;  %v452_v23 = vld [vmem:[%s951_s23] sm:$0xff] }
  0x28   : > { %338 = vperm.xlu1 %734, %v335_v6   ;;  %649 = vmatprep.subr.mxu1 %v842_v3  ;;  %vm347_vm4 = vcmp.lt.s32.totalorder %v346_v12, 196  ;;  %v350_v26 = vld [vmem:[#allocation2] sm:$0xff]  ;;  %v456_v43 = vld [vmem:[#allocation4] sm:$0xff]  ;;  %v365_v46 = vld [vmem:[#allocation3] sm:$0xff] }
  0x29   : > { %733 = vset.pattern.permute.xlu0 %v844_v8  ;;  %651 = vmatprep.mubr.msk.f32.mxu1 %vm843_vm3, %v842_v3 }
  0x2a   : > { %644 = vmatmul.mubr.msk.f32.gmra.mxu0 %vm245_vm2, %v243_v7 }
  0xa3   : > { %v339_v13 = vpop.permute.xlu1 %338 }
  0xe6   : > { %v321_v14 = vpop.f32.mrf.mxu0  ;;  %v331_v15 = vpop.f32.mrf.mxu1 }
  0xe7   : > { %v341_v16 = vadd.f32 %v339_v13, %v321_v14  ;;  %v349_v17 = vsel %vm347_vm4, %v331_v15, -inf }
  0xe8   : > { %453 = vmax.xlane.f32.xlu1 %v349_v17  ;;  %v642_v18 = vpop.f32.mrf.mxu0  ;;  %v648_v19 = vpop.f32.mrf.mxu1 }
  0xe9   : > { %650 = vmatpush3.xpose.msra.mxu1 %v341_v16 }
  0xea   : > { %v326_v20 = vpop.f32.mrf.mxu0 }
  0xeb   : > { %v348_v21 = vsel %vm347_vm4, %v326_v20, -inf }
  0xec   : > { %351 = vmax.xlane.f32.xlu0 %v348_v21  ;;  %v645_v22 = vpop.f32.mrf.mxu0 }
 0x171   : > { %v454_v24 = vpop.xlane.xlu1 %453 }
 0x172   : > { %v455_v25 = vmax.f32 %v452_v23, %v454_v24 }
 0x174   : > { %v457_v27 = vsub.f32 %v452_v23, %v455_v25  ;;  %473 = vst.msk [vmem:[%s951_s23] sm:$0xff] %vm370_vm5, %v455_v25  ;;  %463 = vperm.xlu1 %734, %v455_v25  }
 0x175   : > { %v352_v28 = vpop.xlane.xlu0 %351 }
 0x176   : > { %v353_v29 = vmax.f32 %v350_v26, %v352_v28  ;;  %v458_v41 = vmul.f32 1.442695, %v457_v27 }
 0x178   : > { %v354_v30 = vsub.f32 %v350_v26, %v353_v29  ;;  %372 = vst.msk [vmem:[#allocation2] sm:$0xff] %vm370_vm5, %v353_v29  ;;  %359 = vperm.xlu0 %733, %v353_v29  }
 0x17a   : > { %v355_v39 = vmul.f32 1.442695, %v354_v30 }
 0x1ef   : > { %v464_v31 = vpop.permute.xlu1 %463 }
 0x1f0   : > { %v466_v32 = vsub.f32 %v349_v17, %v464_v31 }
 0x1f2   : > { %v467_v33 = vmul.f32 1.442695, %v466_v32 }
 0x1f3   : > { %v360_v34 = vpop.permute.xlu0 %359 }
 0x1f4   : > { %735 = vpow2.f32 %v467_v33  ;;  %v362_v35 = vsub.f32 %v348_v21, %v360_v34 }
 0x1f6   : > { %v363_v36 = vmul.f32 1.442695, %v362_v35 }
 0x1f8   : > { %737 = vpow2.f32 %v363_v36 }
 0x1f9   : > { %739 = vpow2.f32 %v355_v39 }
 0x1fa   : > { %741 = vpow2.f32 %v458_v41 }
 0x201   : > { %v736_v37 = vpop.eup %735 }
 0x202   : > { %469 = vadd.xlane.f32.xlu1 %v736_v37 }
 0x205   : > { %v738_v38 = vpop.eup %737 }
 0x206   : > { %367 = vadd.xlane.f32.xlu0 %v738_v38  ;;  %652 = vmatmul.mubr.f32.vlgmr.msra.gmra.mxu1 %v738_v38  ;;  %v740_v40 = vpop.eup %739 }
 0x207   : > { %v742_v42 = vpop.eup %741  ;;  %v366_v48 = vmul.f32 %v740_v40, %v365_v46 }
 0x208   : > { %v460_v44 = vmul.f32 %v742_v42, %v456_v43 }
 0x21c   : > { %446 = vperm.xlu0 %733, %v740_v40  }
 0x28b   : > { %v470_v45 = vpop.xlane.xlu1 %469 }
 0x28c   : > { %v471_v47 = vadd.f32 %v470_v45, %v460_v44 }
 0x28e   : > { %472 = vst.msk [vmem:[#allocation4] sm:$0xff] %vm370_vm5, %v471_v47 }
 0x28f   : > { %v368_v49 = vpop.xlane.xlu0 %367 }
 0x290   : > { %v369_v50 = vadd.f32 %v368_v49, %v366_v48 }
 0x292   : > { %371 = vst.msk [vmem:[#allocation3] sm:$0xff] %vm370_vm5, %v369_v50 }
 0x297   : > { %v447_v52 = vpop.permute.xlu0 %446 }
 0x298   : > { %v449_v53 = vmul.f32 %v447_v52, %v443_v51 }
 0x2c5   : > { %477 = sbr.rel (%p627_p1) target bundleno = 860 (0x35c), region = 40 }
 0x2c6   : > { %v439_v54 = vpop.f32.mrf.mxu1 }
 0x2c7   : > { %v450_v55 = vadd.f32 %v449_v53, %v439_v54 }
 0x2c8   : > { %v653_v56 = vpop.f32.mrf.mxu1 }
 0x2c9   : > { %451 = vst.msk [vmem:[%s956_s25] sm:$0xff] %vm245_vm2, %v450_v55 }
 0x2ca   : > { %v478_v57 = vld [vmem:[#allocation3] sm:$0xff]  ;;  %v480_v58 = vld [vmem:[#allocation4] sm:$0xff]  ;;  %v845_v59 = vmov 0  }
 0x2cb   : > { %743 = vset.pattern.permute.xlu0 %v845_v59  ;;  %v479_v60 = vmul.f32 196.0, %v478_v57 }
 0x2cd   : > { %v481_v61 = vmul.f32 %v480_v58, %v479_v60 }
 0x2cf   : > { %744 = vrcp.f32 %v481_v61 }
 0x2d0   : > { %v484_v63 = vld [vmem:[%s956_s25] sm:$0xff] }
 0x2dc   : > { %v745_v62 = vpop.eup %744 }
 0x2dd   : > { %487 = vperm.xlu0 %743, %v745_v62  }
 0x358   : > { %v488_v0 = vpop.permute.xlu0 %487 }
 0x359   : > { %v490_v1 = vmul.f32 %v488_v0, %v484_v63 }
 0x35b   : > { %491 = vst.msk [vmem:[%s956_s25] sm:$0xff] %vm245_vm2, %v490_v1 }
 0x35c PF: > { %s629_s18 = sshll.u32 %s826_s19, 7  ;;  %s510_s30 = sshll.u32 %s956_s25, 4  ;;  %s511_s30 = int_to_ptr.vmem [resolvable:$true] %s510_s30 }
 0x35d   : > { %s508_s29 = scalar_lea.hbm %s1040_s3, %s629_s18  ;;  %s493_s7 = scalar_lea.sflag [#allocation6], %s209_s6 }
 0x35e   : > { %s746_s8 = scalar_lea.vmem %s511_s30, 128  ;;  %s846_s9 = smov [#allocation5]  }
 0x35f   : > { %p747_p2 = scmp.ne.s32.totalorder %s511_s30, %s746_s8  ;;  %s750_s10 = sshll.u32 %s846_s9, 4  ;;  %s751_s10 = int_to_ptr.vmem [resolvable:$false] %s750_s10 }
 0x360   : > { %s752_s11 = scalar_lea.vmem %s751_s10, 256  ;;  %p753_p6 = scmp.lt.s32.totalorder %s511_s30, %s751_s10 }
 0x361   : > { %p748_p4 = pnand %p747_p2, %p921_p3  ;;  %p754_p7 = scmp.lt.s32.totalorder %s752_s11, %s746_s8 }
 0x363   : > { %p749_p5 = pneg %p748_p4  ;;  %p755_p8 = por %p754_p7, %p753_p6 }
 0x365   : > { %p756_p10 = pnand %p755_p8, %p749_p5 }
 0x367   : > { %759 = shalt.err (!%p756_p10)
}
 0x368   : > { %s760_s19 = scalar_lea.hbm %s508_s29, 128  ;;  %s764_s26 = scalar_lea.hbm %s1040_s3, 256 }
 0x369   : > { %p761_p11 = scmp.ne.s32.totalorder %s508_s29, %s760_s19  ;;  %p765_p0 = scmp.lt.s32.totalorder %s508_s29, %s1040_s3 }
 0x36a   : > { %p766_p1 = scmp.lt.s32.totalorder %s764_s26, %s760_s19 }
 0x36b   : > { %p762_p12 = pnand %p761_p11, %p921_p3 }
 0x36c   : > { %p767_p2 = por %p766_p1, %p765_p0 }
 0x36d   : > { %p763_p13 = pneg %p762_p12 }
 0x36f   : > { %p768_p4 = pnand %p767_p2, %p763_p13 }
 0x371   : > { %771 = shalt.err (!%p768_p4)
}
 0x372   : > { %656 = dma.vmem_to_hbm [thread:$0]  (%p921_p3), %s511_s30, 128, %s508_s29, %s493_s7  }
 0x373 PF: > { %p662_p5 = scmp.ge.s32.totalorder %s838_s22, 2  ;;  %s525_s14 = sand.u32 1, %s810_s15  }
 0x374   : > { %s526_s18 = scalar_lea.sflag [#allocation6], %s525_s14 }
 0x375   : > { %p659_p6 = pnand %p662_p5, %p931_p9 }
 0x377   : > { %p660_p7 = pneg %p659_p6 }
 0x379   : > { %805 = dma.done.wait (%p660_p7), %s526_s18, 128  }
 0x37a   : > { %807 = vsyncadd (%p660_p7), %s526_s18, 4294967168  ;;  %s18_s22 = sadd.s32 1, %s838_s22   ;;  %s1047_s27 = sld [smem:[#allocation8_spill]] }
 0x37b   : > { %p15_p8 = scmp.ge.s32.totalorder %s18_s22, 6   ;;  %s1048_s23 = sld [smem:[#allocation9_spill]] }
 0x37c   : > { %s1049_s15 = smov %s814_s16  ;;  %s1050_s16 = smov %s818_s17 }
 0x37d   : > { %s1051_s17 = smov %s939_s5  ;;  %s1052_s18 = smov %s830_s20 }
 0x37e   : > { %s1053_s19 = smov %s834_s21  ;;  %17 = sbr.rel (!%p15_p8) target bundleno = 5 (0x5), region = 87 }
 0x380   : > { %s1054_s20 = smov %s1047_s27 }
 0x381   : > { %s1055_s21 = smov %s1048_s23 }
 0x383   :  { %538 = vsyncpa [#allocation6], 1 }
 0x384   :  { %540 = vsyncpa [#allocation6 + $0x1], 1 }

</bundles_post_ra>
